<compile_context>
chip_gen: v7x
topology: tpu7x:2x2x1
jax: 0.10.0
libtpu: 0.0.40
codegen_flags: <defaults>
</compile_context>

<pallas_src>
import math

import jax
import jax.numpy as jnp
import numpy as np
from jax.experimental import pallas as pl
from jax.experimental.pallas import tpu as pltpu


# ---------------------------------------------------------------------------
# helpers
# ---------------------------------------------------------------------------

def _pick_tile(dim, pref, mult):
    """Largest tile <= pref that is a multiple of `mult` and divides `dim`;
    if dim <= pref (or no divisor found) use the full dim (always legal)."""
    if dim <= pref:
        return dim
    t = (pref // mult) * mult
    while t >= mult:
        if dim % t == 0:
            return t
        t -= mult
    return dim


# ---------------------------------------------------------------------------
# tiled linear (x @ w_t + b) kernel
# ---------------------------------------------------------------------------

def _linear_kernel(x_ref, w_ref, b_ref, o_ref, acc_ref):
    @pl.when(pl.program_id(2) == 0)
    def _():
        acc_ref[...] = jnp.zeros_like(acc_ref)

    acc_ref[...] += jnp.dot(x_ref[...], w_ref[...],
                            preferred_element_type=jnp.float32)

    @pl.when(pl.program_id(2) == pl.num_programs(2) - 1)
    def _():
        o_ref[...] = (acc_ref[...] + b_ref[...]).astype(o_ref.dtype)


def pallas_linear(x2d, w_t, b):
    """x2d: (M, K); w_t: (K, N) already transposed; b: (N,)."""
    m, k = x2d.shape
    n = w_t.shape[1]
    tm = _pick_tile(m, 256, 8)
    tk = _pick_tile(k, 512, 128)
    tn = _pick_tile(n, 256, 128)
    grid = (m // tm, n // tn, k // tk)
    return pl.pallas_call(
        _linear_kernel,
        out_shape=jax.ShapeDtypeStruct((m, n), x2d.dtype),
        grid_spec=pltpu.PrefetchScalarGridSpec(
            num_scalar_prefetch=0,
            grid=grid,
            in_specs=[
                pl.BlockSpec((tm, tk), lambda i, j, kk: (i, kk)),
                pl.BlockSpec((tk, tn), lambda i, j, kk: (kk, j)),
                pl.BlockSpec((1, tn), lambda i, j, kk: (0, j)),
            ],
            out_specs=pl.BlockSpec((tm, tn), lambda i, j, kk: (i, j)),
            scratch_shapes=[pltpu.VMEM((tm, tn), jnp.float32)],
        ),
        compiler_params=pltpu.CompilerParams(
            dimension_semantics=("parallel", "parallel", "arbitrary")),
    )(x2d, w_t, b.reshape(1, n))


# ---------------------------------------------------------------------------
# thresholded attention kernel (all heads of one batch / q-block per step)
# ---------------------------------------------------------------------------

def _make_attn_kernel(n_heads, head_dim):
    H, hd = n_heads, head_dim

    def kernel(scalars_ref, q_ref, k_ref, v_ref, o_ref):
        # scalars_ref: SMEM f32 (1 + H,) = [attn_scale, thr_0 .. thr_{H-1}]
        scale = scalars_ref[0]
        q = q_ref[0]          # (tq, C)
        k = k_ref[0]          # (T,  C)
        v = v_ref[0]          # (T,  C)

        head_outs = []
        for h in range(H):                       # H is static & small: unrolled
            lo, hi = h * hd, (h + 1) * hd
            qh = q[:, lo:hi]                     # (tq, hd)
            kh = k[:, lo:hi]                     # (T,  hd)
            vh = v[:, lo:hi]                     # (T,  hd)

            # q @ k^T via dot_general (no explicit transpose of k)
            s = jax.lax.dot_general(
                qh, kh,
                dimension_numbers=(((1,), (1,)), ((), ())),
                preferred_element_type=jnp.float32) * scale      # (tq, T)

            # thresholding (eval / mask=None: scores are finite, isinf dropped)
            s = jnp.where(s < scalars_ref[1 + h], jnp.float32(-10000.0), s)

            # softmax over keys
            m = jnp.max(s, axis=-1, keepdims=True)
            e = jnp.exp(s - m)
            denom = jnp.sum(e, axis=-1, keepdims=True)
            w = e * pl.reciprocal(denom, approx=True)

            head_outs.append(
                jnp.dot(w, vh, preferred_element_type=jnp.float32))  # (tq, hd)

        # single lane-dense (tq, C) store
        o_ref[0] = jnp.concatenate(head_outs, axis=-1).astype(o_ref.dtype)

    return kernel


def pallas_thresholded_attention(q_arr, k_arr, v_arr, scalars, n_heads, head_dim,
                                 qkv_packed):
    """q/k/v_arr: (B, T, C) (or all three the same packed (B, T, 3C) array when
    qkv_packed=True). scalars: (1+H,) f32 [attn_scale, thr...]. -> (B, T, C)."""
    B, T, _ = q_arr.shape
    H = n_heads
    C = H * head_dim
    tq = _pick_tile(T, 256, 8)
    cq, ck, cv = (0, 1, 2) if qkv_packed else (0, 0, 0)

    return pl.pallas_call(
        _make_attn_kernel(H, head_dim),
        out_shape=jax.ShapeDtypeStruct((B, T, C), q_arr.dtype),
        grid_spec=pltpu.PrefetchScalarGridSpec(
            num_scalar_prefetch=0,
            grid=(B, T // tq),
            in_specs=[
                pl.BlockSpec(memory_space=pltpu.MemorySpace.SMEM),       # scalars
                pl.BlockSpec((1, tq, C), lambda b, qi: (b, qi, cq)),     # q
                pl.BlockSpec((1, T, C), lambda b, qi: (b, 0, ck)),       # k
                pl.BlockSpec((1, T, C), lambda b, qi: (b, 0, cv)),       # v
            ],
            out_specs=pl.BlockSpec((1, tq, C), lambda b, qi: (b, qi, 0)),
        ),
        compiler_params=pltpu.CompilerParams(
            dimension_semantics=("parallel", "parallel")),
    )(scalars, q_arr, k_arr, v_arr)


# ---------------------------------------------------------------------------
# params + forward wrapper
# ---------------------------------------------------------------------------

def init_params(key, embed_dim, n_heads):
    head_dim = embed_dim // n_heads
    ks = jax.random.split(key, 8)

    def linear_init(kw, kb, fan_in, fan_out):
        bound = 1.0 / math.sqrt(fan_in)
        w = jax.random.uniform(kw, (fan_out, fan_in), jnp.float32, -bound, bound)
        b = jax.random.uniform(kb, (fan_out,), jnp.float32, -bound, bound)
        return w, b

    wq, bq = linear_init(ks[0], ks[1], embed_dim, embed_dim)
    wk, bk = linear_init(ks[2], ks[3], embed_dim, embed_dim)
    wv, bv = linear_init(ks[4], ks[5], embed_dim, embed_dim)
    wo, bo = linear_init(ks[6], ks[7], embed_dim, embed_dim)

    return {
        # torch-layout params (reference / checkpoint compatible)
        "wq": wq, "bq": bq, "wk": wk, "bk": bk, "wv": wv, "bv": bv,
        "wo": wo, "bo": bo,
        "attn_scale": jnp.full((1,), 1.0 / math.sqrt(head_dim), jnp.float32),
        "score_running_mean": jnp.zeros((n_heads,), jnp.float32),
        "score_running_var": jnp.ones((n_heads,), jnp.float32),
        "score_threshold": jnp.full((1,), 0.5, jnp.float32),
        # kernel-side packed / pre-transposed weights (built once)
        "w_qkv_t": jnp.concatenate([wq, wk, wv], axis=0).T,   # (Cin, 3C)
        "b_qkv": jnp.concatenate([bq, bk, bv], axis=0),        # (3C,)
        "w_out_t": wo.T,                                        # (Cin, C)
    }


def thresholded_attention_forward(params, x, n_heads):
    B, T, C = x.shape
    H = n_heads
    hd = C // H

    x2d = x.reshape(B * T, C)

    # fused QKV projection -> (B, T, 3C)
    qkv = pallas_linear(x2d, params["w_qkv_t"], params["b_qkv"]).reshape(B, T, 3 * C)

    # SMEM scalar pack: [attn_scale, per-head threshold...]
    thr = jax.nn.sigmoid(params["score_threshold"]) * jnp.sqrt(
        jnp.clip(params["score_running_var"], 1e-6))                    # (H,)
    scalars = jnp.concatenate(
        [params["attn_scale"].reshape(1), thr]).astype(jnp.float32)     # (1+H,)

    if C % 128 == 0:
        # lane-aligned: read q/k/v straight out of the packed qkv buffer via
        # column-offset index maps (no slice copies at all)
        attn = pallas_thresholded_attention(qkv, qkv, qkv, scalars, H, hd,
                                            qkv_packed=True)
    else:
        # small / unaligned C: a C-wide block over the 3C-wide array would break
        # the (8,128) lane-tiling rule, so split once in the wrapper instead
        q = qkv[..., :C]
        k = qkv[..., C:2 * C]
        v = qkv[..., 2 * C:]
        attn = pallas_thresholded_attention(q, k, v, scalars, H, hd,
                                            qkv_packed=False)

    # attention output is already (B, T, C) -> out projection, no transposes
    out = pallas_linear(attn.reshape(B * T, C), params["w_out_t"], params["bo"])
    return out.reshape(B, T, C)


# ---------------------------------------------------------------------------
# Pure-JAX reference (mirrors PyTorch eval-mode forward)
# ---------------------------------------------------------------------------

def reference_forward(params, x, n_heads):
    B, T, C = x.shape
    H = n_heads
    hd = C // H

    def lin(x2d, w, b):
        return x2d @ w.T + b

    x2d = x.reshape(B * T, C)
    q = lin(x2d, params["wq"], params["bq"]).reshape(B, T, H, hd).transpose(0, 2, 1, 3)
    k = lin(x2d, params["wk"], params["bk"]).reshape(B, T, H, hd).transpose(0, 2, 1, 3)
    v = lin(x2d, params["wv"], params["bv"]).reshape(B, T, H, hd).transpose(0, 2, 1, 3)

    scores = jnp.einsum("bhtd,bhsd->bhts", q, k) * params["attn_scale"]
    thr = jax.nn.sigmoid(params["score_threshold"]) * jnp.sqrt(
        jnp.clip(params["score_running_var"], 1e-6))
    mask = (~jnp.isinf(scores)) & (scores < thr.reshape(1, H, 1, 1))
    scores = jnp.where(mask, -10000.0, scores)
    w = jax.nn.softmax(scores, axis=-1)
    out = jnp.einsum("bhts,bhsd->bhtd", w, v)
    out = out.transpose(0, 2, 1, 3).reshape(B * T, C)
    out = lin(out, params["wo"], params["bo"])
    return out.reshape(B, T, C)


if __name__ == "__main__":
    # config A exercises the small/unaligned path, config B the packed
    # lane-aligned fast path
    for (B, T, EMBED, HEADS) in [(2, 8, 32, 4), (2, 16, 128, 4)]:
        key = jax.random.PRNGKey(0)
        kp, kx = jax.random.split(key)
        params = init_params(kp, EMBED, HEADS)
        x = jax.random.normal(kx, (B, T, EMBED), jnp.float32)

        out = jax.block_until_ready(
            thresholded_attention_forward(params, x, HEADS))
        ref = reference_forward(params, x, HEADS)
        # approx reciprocal in the softmax slightly loosens the f32 tolerance
        np.testing.assert_allclose(np.asarray(out), np.asarray(ref),
                                   rtol=5e-3, atol=5e-4)

    print("KERNEL_OK")
</pallas_src>

<mosaic_0001>
module attributes {stable_mosaic.version = 11 : i64} {
  func.func @_linear_kernel(%arg0: i32, %arg1: i32, %arg2: i32, %arg3: memref<16x32xf32, #tpu.memory_space<vmem>>, %arg4: memref<32x96xf32, #tpu.memory_space<vmem>>, %arg5: memref<1x96xf32, #tpu.memory_space<vmem>>, %arg6: memref<16x96xf32, #tpu.memory_space<vmem>>, %arg7: memref<16x96xf32, #tpu.memory_space<vmem>>) attributes {dimension_semantics = [#tpu.dimension_semantics<parallel>, #tpu.dimension_semantics<parallel>, #tpu.dimension_semantics<arbitrary>], iteration_bounds = array<i64: 1, 1, 1>, scalar_prefetch = 0 : i64, scratch_operands = 1 : i64, tpu.core_type = #tpu.core_type<tc>, window_params = [{transform_indices = @transform_0, window_bounds = array<i64: 16, 32>}, {transform_indices = @transform_1, window_bounds = array<i64: 32, 96>}, {transform_indices = @transform_2, window_bounds = array<i64: 1, 96>}, {transform_indices = @transform_3, window_bounds = array<i64: 16, 96>}]} {
    %c0_i32 = arith.constant 0 : i32
    %0 = arith.cmpi eq, %arg2, %c0_i32 : i32
    %1 = arith.extui %0 : i1 to i32
    %c0_i32_0 = arith.constant 0 : i32
    %2 = arith.cmpi ne, %1, %c0_i32_0 : i32
    scf.if %2 {
      %cst_10 = arith.constant 0.000000e+00 : f32
      %12 = vector.broadcast %cst_10 : f32 to vector<16x96xf32>
      %c0_11 = arith.constant 0 : index
      %c0_12 = arith.constant 0 : index
      %13 = vector.load %arg7[%c0_11, %c0_12] : memref<16x96xf32, #tpu.memory_space<vmem>>, vector<16x96xf32>
      tpu.vector_store %arg7[%c0_11, %c0_12], %12 {strides = array<i32>} : memref<16x96xf32, #tpu.memory_space<vmem>>, vector<16x96xf32>,
    } else {
    }
    %c0 = arith.constant 0 : index
    %c0_1 = arith.constant 0 : index
    %3 = vector.load %arg7[%c0, %c0_1] : memref<16x96xf32, #tpu.memory_space<vmem>>, vector<16x96xf32>
    %c0_2 = arith.constant 0 : index
    %c0_3 = arith.constant 0 : index
    %4 = vector.load %arg3[%c0_2, %c0_3] : memref<16x32xf32, #tpu.memory_space<vmem>>, vector<16x32xf32>
    %c0_4 = arith.constant 0 : index
    %c0_5 = arith.constant 0 : index
    %5 = vector.load %arg4[%c0_4, %c0_5] : memref<32x96xf32, #tpu.memory_space<vmem>>, vector<32x96xf32>
    %cst = arith.constant dense<0.000000e+00> : vector<16x96xf32>
    %6 = tpu.matmul %4, %5, %cst {dimension_numbers = #tpu.dot_dimension_numbers<[1], [0], [0], [1], [0, 0, 1, 1], [], []>} : vector<16x32xf32>, vector<32x96xf32>, vector<16x96xf32> -> vector<16x96xf32>
    %7 = arith.addf %3, %6 : vector<16x96xf32>
    %c0_6 = arith.constant 0 : index
    %c0_7 = arith.constant 0 : index
    %8 = vector.load %arg7[%c0_6, %c0_7] : memref<16x96xf32, #tpu.memory_space<vmem>>, vector<16x96xf32>
    tpu.vector_store %arg7[%c0_6, %c0_7], %7 {strides = array<i32>} : memref<16x96xf32, #tpu.memory_space<vmem>>, vector<16x96xf32>,
    %c0_i32_8 = arith.constant 0 : i32
    %9 = arith.cmpi eq, %arg2, %c0_i32_8 : i32
    %10 = arith.extui %9 : i1 to i32
    %c0_i32_9 = arith.constant 0 : i32
    %11 = arith.cmpi ne, %10, %c0_i32_9 : i32
    scf.if %11 {
      %c0_10 = arith.constant 0 : index
      %c0_11 = arith.constant 0 : index
      %12 = vector.load %arg7[%c0_10, %c0_11] : memref<16x96xf32, #tpu.memory_space<vmem>>, vector<16x96xf32>
      %c0_12 = arith.constant 0 : index
      %c0_13 = arith.constant 0 : index
      %13 = vector.load %arg5[%c0_12, %c0_13] : memref<1x96xf32, #tpu.memory_space<vmem>>, vector<1x96xf32>
      %14 = vector.broadcast %13 : vector<1x96xf32> to vector<16x96xf32>
      %15 = arith.addf %12, %14 : vector<16x96xf32>
      %c0_14 = arith.constant 0 : index
      %c0_15 = arith.constant 0 : index
      %16 = vector.load %arg6[%c0_14, %c0_15] : memref<16x96xf32, #tpu.memory_space<vmem>>, vector<16x96xf32>
      tpu.vector_store %arg6[%c0_14, %c0_15], %15 {strides = array<i32>} : memref<16x96xf32, #tpu.memory_space<vmem>>, vector<16x96xf32>,
    } else {
    }
    return
  }
  func.func @transform_0(%arg0: i32, %arg1: i32, %arg2: i32) -> (i32, i32) {
    %c0_i32 = arith.constant 0 : i32
    return %arg0, %arg2 : i32, i32
  }
  func.func @transform_1(%arg0: i32, %arg1: i32, %arg2: i32) -> (i32, i32) {
    %c0_i32 = arith.constant 0 : i32
    return %arg2, %arg1 : i32, i32
  }
  func.func @transform_2(%arg0: i32, %arg1: i32, %arg2: i32) -> (i32, i32) {
    %c0_i32 = arith.constant 0 : i32
    %c0_i32_0 = arith.constant 0 : i32
    return %c0_i32, %arg1 : i32, i32
  }
  func.func @transform_3(%arg0: i32, %arg1: i32, %arg2: i32) -> (i32, i32) {
    %c0_i32 = arith.constant 0 : i32
    return %arg0, %arg1 : i32, i32
  }
}

</mosaic_0001>

<bundles_post_ra>
// kernel: tpu_custom_call.1
= control target key start
LH: loop header
LB: loop body
LE: loop exit
PB: predicated region body
PF: predicated region fallthrough
CT: control target
= control target key end

     0   :  { %8 = vsyncpa [#allocation4], 0  ;;  %s365_s0 = inlined_call_operand.hbm [shape: f32[16,32], index: 0, kind: input, shape index: {}]   ;;  %s366_s1 = inlined_call_operand.hbm [shape: f32[32,96], index: 1, kind: input, shape index: {}]   ;;  %s367_s2 = inlined_call_operand.vmem [shape: f32[1,96], index: 2, kind: input, shape index: {}]   ;;  %s368_s3 = inlined_call_operand.hbm [shape: f32[16,96], index: 3, kind: output, shape index: {}]  }
   0x1   :  { %9 = vsyncpa [#allocation7], 0 }
   0x2   :  { %10 = vsyncpa [#allocation5], 0  ;;  %s285_s12 = smov [#allocation3]   ;;  %s213_s16 = scalar_lea.hbm %s365_s0, 256 }
   0x3   :  { %s16_s13 = sshll.u32 %s285_s12, 4  ;;  %p214_p0 = scmp.ne.s32.totalorder %s365_s0, %s213_s16  ;;  %s17_s13 = int_to_ptr.vmem [resolvable:$true] %s16_s13 }
   0x4   :  { %p217_p1 = scmp.lt.u32.totalorder %s213_s16, %s365_s0 }
   0x6   :  { %p219_p2 = pnand %p217_p1, %p214_p0 }
   0x8   :  { %222 = shalt.err (!%p219_p2)
}
   0x9   :  { %s223_s21 = scalar_lea.vmem %s17_s13, 256  ;;  %p228_p4 = scmp.lt.s32.totalorder %s17_s13, %s17_s13 }
   0xa   :  { %p224_p3 = scmp.ne.s32.totalorder %s17_s13, %s223_s21  ;;  %p229_p5 = scmp.lt.s32.totalorder %s223_s21, %s223_s21 }
   0xc   :  { %p230_p6 = por %p229_p5, %p228_p4 }
   0xe   :  { %p231_p7 = pnand %p230_p6, %p224_p3 }
  0x10   :  { %234 = shalt.err (!%p231_p7)
}
  0x11   :  { %s286_s22 = smov 128   ;;  %s287_s23 = smov 8  }
  0x12   :  { %22 = dma.hbm_to_vmem [thread:$0]  %s365_s0, 256, %s17_s13, [#allocation4], %s286_s22, %s286_s22, %s287_s23  }
  0x13   :  { %s288_s26 = smov [#allocation6]   ;;  %s235_s30 = scalar_lea.hbm %s366_s1, 512 }
  0x14   :  { %s28_s27 = sshll.u32 %s288_s26, 4  ;;  %p236_p8 = scmp.ne.s32.totalorder %s366_s1, %s235_s30  ;;  %s29_s27 = int_to_ptr.vmem [resolvable:$true] %s28_s27 }
  0x15   :  { %p239_p9 = scmp.lt.u32.totalorder %s235_s30, %s366_s1 }
  0x17   :  { %p241_p10 = pnand %p239_p9, %p236_p8 }
  0x19   :  { %244 = shalt.err (!%p241_p10)
}
  0x1a   :  { %s245_s8 = scalar_lea.vmem %s29_s27, 512  ;;  %p250_p12 = scmp.lt.s32.totalorder %s29_s27, %s29_s27 }
  0x1b   :  { %p246_p11 = scmp.ne.s32.totalorder %s29_s27, %s245_s8  ;;  %p251_p13 = scmp.lt.s32.totalorder %s245_s8, %s245_s8 }
  0x1d   :  { %p252_p0 = por %p251_p13, %p250_p12 }
  0x1f   :  { %p253_p1 = pnand %p252_p0, %p246_p11 }
  0x21   :  { %256 = shalt.err (!%p253_p1)
}
  0x22   :  { %34 = dma.hbm_to_vmem [thread:$0]  %s366_s1, 512, %s29_s27, [#allocation7], %s286_s22, %s286_s22, %s287_s23  }
  0x23   :  { %279 = dma.done.wait [#allocation4], 256  }
  0x24   :  { %280 = vsyncadd [#allocation4], 4294967040 }
  0x25   :  { %281 = dma.done.wait [#allocation7], 512  }
  0x26   :  { %282 = vsyncadd [#allocation7], 4294966784  ;;  %vm47_vm0 = vcmask 785408   ;;  %v289_v0 = vmov 0.0   ;;  %vm58_vm1 = vcmask 261120   ;;  %v54_v1 = vld [vmem:[#allocation6] sm:$0xff] }
  0x27   :  { %49 = vst.msk [vmem:[#allocation2 + $0x8] sm:$0xff] %vm47_vm0, %v289_v0  ;;  %48 = vst.msk [vmem:[#allocation2] sm:$0xff] %vm47_vm0, %v289_v0  ;;  %v55_v2 = vld [vmem:[#allocation6 + $0x8] sm:$0xff]  ;;  %v56_v3 = vld [vmem:[#allocation6 + $0x10] sm:$0xff]  ;;  %s290_s11 = smov [#allocation8]  }
  0x28   :  { %v199_v4 = vpack.c.bf16 %v55_v2, %v54_v1  ;;  %v57_v5 = vld [vmem:[#allocation6 + $0x18] sm:$0xff]  ;;  %v52_v6 = vld [vmem:[#allocation3] sm:$0xff]  ;;  %v181_v15 = vld [vmem:[%s367_s2] ss:$0 sm:$0xff]  ;;  %s166_s12 = sshll.u32 %s290_s11, 4  ;;  %s167_s12 = int_to_ptr.vmem [resolvable:$true] %s166_s12 }
  0x29   :  { %v203_v7 = vpack.c.bf16 %v57_v5, %v56_v3  ;;  %196 = vmatprep.mubr.msk.f32.mxu0 %vm58_vm1, %v52_v6  ;;  %v53_v8 = vld [vmem:[#allocation3 + $0x8] sm:$0xff]  ;;  %s257_s13 = scalar_lea.vmem %s167_s12, 256  ;;  %p262_p3 = scmp.lt.s32.totalorder %s167_s12, %s167_s12 }
  0x2a   :  { %200 = vmatprep.subr.bf16.mxu0 %v199_v4  ;;  %p258_p2 = scmp.ne.s32.totalorder %s167_s12, %s257_s13  ;;  %p263_p4 = scmp.lt.s32.totalorder %s257_s13, %s257_s13 }
  0x2b   :  { %202 = vmatpush3.bf16.msra.mxu0 %v199_v4 }
  0x2c   :  { %204 = vmatprep.subr.bf16.mxu0 %v203_v7  ;;  %p264_p5 = por %p263_p4, %p262_p3 }
  0x2e   :  { %v51_v9 = vld [vmem:[#allocation2 + $0x8] sm:$0xff]  ;;  %v50_v10 = vld [vmem:[#allocation2] sm:$0xff]  ;;  %p265_p6 = pnand %p264_p5, %p258_p2 }
  0x2f   :  { %206 = vmatpush3.bf16.msra.mxu0 %v203_v7 }
  0x32   :  { %197 = vmatmul.mubr.msk.f32.vlgmr.msra.gmra.mrb[0].mxu0 %vm58_vm1, %v53_v8 }
 0x105   :  { %v198_v11 = vpop.f32.mrb[0].mxu0 }
 0x106   :  { %v141_v12 = vadd.f32 %v198_v11, %v51_v9  ;;  %v131_v13 = vpop.f32.mrb[1].mxu0 }
 0x107   :  { %v140_v14 = vadd.f32 %v131_v13, %v50_v10 }
 0x108   :  { %144 = vst.msk [vmem:[#allocation2 + $0x8] sm:$0xff] %vm47_vm0, %v141_v12 }
 0x109   :  { %143 = vst.msk [vmem:[#allocation2] sm:$0xff] %vm47_vm0, %v140_v14 }
 0x10f   :  { %v149_v16 = vld [vmem:[#allocation2 + $0x8] sm:$0xff] }
 0x110   :  { %v148_v17 = vld [vmem:[#allocation2] sm:$0xff]  ;;  %v158_v18 = vadd.f32 %v181_v15, %v149_v16 }
 0x111   :  { %v157_v19 = vadd.f32 %v181_v15, %v148_v17 }
 0x112   :  { %160 = vst.msk [vmem:[#allocation8 + $0x8] sm:$0xff] %vm47_vm0, %v158_v18 }
 0x113   :  { %159 = vst.msk [vmem:[#allocation8] sm:$0xff] %vm47_vm0, %v157_v19 }
 0x114   :  { %268 = shalt.err (!%p265_p6)
}
 0x115   :  { %s269_s15 = scalar_lea.hbm %s368_s3, 256 }
 0x116   :  { %p270_p7 = scmp.ne.s32.totalorder %s368_s3, %s269_s15  ;;  %p273_p8 = scmp.lt.u32.totalorder %s269_s15, %s368_s3 }
 0x118   :  { %p275_p9 = pnand %p273_p8, %p270_p7 }
 0x11a   :  { %278 = shalt.err (!%p275_p9)
}
 0x11b   :  { %172 = dma.vmem_to_hbm [thread:$0]  %s167_s12, 256, %s368_s3, [#allocation5], %s286_s22, %s286_s22, %s287_s23  }
 0x11c   :  { %283 = dma.done.wait [#allocation5], 256  }
 0x11d   :  { %284 = vsyncadd [#allocation5], 4294967040 }
 0x11e   :  { %176 = vsyncpa [#allocation4], 1 }
 0x11f   :  { %177 = vsyncpa [#allocation7], 1 }
 0x120   :  { %178 = vsyncpa [#allocation5], 1 }

</bundles_post_ra>
